<compile_context>
chip_gen: v5e
topology: v5e:2x2
jax: 0.10.0
libtpu: 0.0.40
codegen_flags: <defaults>
</compile_context>

<pallas_src>
import functools

import jax
import jax.numpy as jnp
from jax.experimental import pallas as pl
from jax.experimental.pallas import tpu as pltpu

_LANE = 128
_SUBLANE = 8
_SPLIT_THRESHOLD = 1024   # below this, one grid step is cheaper than splitting across TCs


def _round_up(x, m):
    return ((x + m - 1) // m) * m


def _dqn_kernel(x_ref, w1_ref, b1_ref, w2_ref, b2_ref, w3_ref, b3_ref, o_ref,
                *, n_actions):
    cdt = w1_ref.dtype
    # fc1 + relu (f32 accumulation on the MXU)
    h1 = jnp.dot(x_ref[...], w1_ref[...], preferred_element_type=jnp.float32)
    h1 = jnp.maximum(h1 + b1_ref[...], 0.0).astype(cdt)
    # fc2 + relu
    h2 = jnp.dot(h1, w2_ref[...], preferred_element_type=jnp.float32)
    h2 = jnp.maximum(h2 + b2_ref[...], 0.0).astype(cdt)
    # fc3 (no activation): lane-dense compute, narrow (action_size) store
    out = jnp.dot(h2, w3_ref[...], preferred_element_type=jnp.float32)
    out = out + b3_ref[...]
    o_ref[...] = out[:, :n_actions].astype(o_ref.dtype)


def init_params(key, state_size, action_size, hidden=64):
    """Raw params mirroring nn.Linear default init; W is (in_features, out_features)."""
    ks = jax.random.split(key, 6)

    def lin(kw, kb, fan_in, fan_out):
        bound = 1.0 / jnp.sqrt(jnp.float32(fan_in))
        w = jax.random.uniform(kw, (fan_in, fan_out), jnp.float32, -bound, bound)
        b = jax.random.uniform(kb, (1, fan_out), jnp.float32, -bound, bound)
        return w, b

    w1, b1 = lin(ks[0], ks[1], state_size, hidden)
    w2, b2 = lin(ks[2], ks[3], hidden, hidden)
    w3, b3 = lin(ks[4], ks[5], hidden, action_size)
    return {"w1": w1, "b1": b1, "w2": w2, "b2": b2, "w3": w3, "b3": b3}


def prepare_params(params, *, dtype=jnp.float32):
    """One-time param prep (hoisted out of the forward path): zero-pad the hidden dim and the
    fc3 output dim to full 128-lane groups; optionally cast operands (e.g. bf16 for v5e).
    Numerically exact: padded columns are zero and stay zero through ReLU."""
    w1, b1 = params["w1"], params["b1"]
    w2, b2 = params["w2"], params["b2"]
    w3, b3 = params["w3"], params["b3"]
    S, H = w1.shape
    A = w3.shape[1]
    Hp = _round_up(H, _LANE)
    Ap = _round_up(A, _LANE)

    def pad2(a, rows, cols):
        return jnp.pad(a, ((0, rows - a.shape[0]), (0, cols - a.shape[1])))

    prepped = {
        "w1": pad2(w1, S, Hp), "b1": pad2(b1, 1, Hp),
        "w2": pad2(w2, Hp, Hp), "b2": pad2(b2, 1, Hp),
        "w3": pad2(w3, Hp, Ap), "b3": pad2(b3, 1, Ap),
    }
    return {k: v.astype(dtype) for k, v in prepped.items()}


def _pick_tile(B, block_b):
    if B < _SPLIT_THRESHOLD:
        return B                                           # single full-batch tile, no padding
    tb = min(block_b, _round_up(pl.cdiv(B, 2), _SUBLANE))  # >=2 steps so v7x can use both TCs
    return max(tb, _SUBLANE)


def dqn_forward(x, prepared, action_size, *, block_b=2048):
    """x: (B, state_size). prepared: output of prepare_params(). Returns (B, action_size) f32."""
    w1, b1 = prepared["w1"], prepared["b1"]
    w2, b2 = prepared["w2"], prepared["b2"]
    w3, b3 = prepared["w3"], prepared["b3"]

    B, S = x.shape
    Hp = w1.shape[1]
    Ap = w3.shape[1]
    A = int(action_size)
    cdt = w1.dtype
    if x.dtype != cdt:
        x = x.astype(cdt)

    TB = _pick_tile(B, block_b)
    grid = (pl.cdiv(B, TB),)

    def resident(arr):
        nd = arr.ndim
        return pl.BlockSpec(arr.shape, lambda i, _nd=nd: (0,) * _nd)

    itemsize = jnp.dtype(cdt).itemsize
    n_w = S * Hp + Hp + Hp * Hp + Hp + Hp * Ap + Ap
    flops = 2 * B * (S * Hp + Hp * Hp + Hp * Ap)
    bytes_accessed = int(itemsize * (B * S + n_w) + 4 * B * A)

    # Double-buffered streamed tiles + resident weights + f32 intermediates, with headroom.
    vmem_bytes = (2 * TB * S * itemsize      # x (double-buffered)
                  + 2 * TB * A * 4           # output (double-buffered, f32)
                  + n_w * itemsize           # resident weights / biases
                  + 3 * TB * Hp * 4)         # h1 / h2 / fc3 accumulator (f32)
    vmem_limit = int(min(max(2 * vmem_bytes, 8 << 20), 48 << 20))

    kernel = functools.partial(_dqn_kernel, n_actions=A)

    return pl.pallas_call(
        kernel,
        out_shape=jax.ShapeDtypeStruct((B, A), jnp.float32),
        grid=grid,
        in_specs=[
            pl.BlockSpec((TB, S), lambda i: (i, 0)),        # x tile streams over batch
            resident(w1), resident(b1),
            resident(w2), resident(b2),
            resident(w3), resident(b3),
        ],
        out_specs=pl.BlockSpec((TB, A), lambda i: (i, 0)),   # narrow, un-padded output
        compiler_params=pltpu.CompilerParams(
            dimension_semantics=("parallel",),               # v7x: shard batch across 2 TCs
            vmem_limit_bytes=vmem_limit),
        cost_estimate=pl.CostEstimate(
            flops=flops, transcendentals=0, bytes_accessed=bytes_accessed),
    )(x, w1, b1, w2, b2, w3, b3)


def _reference(x, raw):
    h1 = jnp.maximum(x @ raw["w1"] + raw["b1"], 0.0)
    h2 = jnp.maximum(h1 @ raw["w2"] + raw["b2"], 0.0)
    return h2 @ raw["w3"] + raw["b3"]


if __name__ == "__main__":
    key = jax.random.PRNGKey(0)
    k_x, k_p = jax.random.split(key)

    batch = 8
    state_size = 16
    action_size = 4

    x = jax.random.normal(k_x, (batch, state_size), jnp.float32)
    raw_params = init_params(k_p, state_size, action_size)
    prepared = prepare_params(raw_params)          # one-time: padding hoisted out of forward

    out = dqn_forward(x, prepared, action_size)
    jax.block_until_ready(out)

    ref = _reference(x, raw_params)
    assert out.shape == (batch, action_size)
    assert jnp.allclose(out, ref, atol=1e-5, rtol=1e-5)

    # Exercise the multi-step path: two grid steps, boundary-clipped last block (no batch pad).
    x_big = jax.random.normal(k_x, (1037, state_size), jnp.float32)
    out_big = dqn_forward(x_big, prepared, action_size)
    jax.block_until_ready(out_big)
    assert out_big.shape == (1037, action_size)
    assert jnp.allclose(out_big, _reference(x_big, raw_params), atol=1e-4, rtol=1e-4)

    print("KERNEL_OK")
</pallas_src>

<mosaic_0001>
module attributes {stable_mosaic.version = 11 : i64} {
  func.func @_dqn_kernel(%arg0: i32, %arg1: memref<8x16xf32, #tpu.memory_space<vmem>>, %arg2: memref<16x128xf32, #tpu.memory_space<vmem>>, %arg3: memref<1x128xf32, #tpu.memory_space<vmem>>, %arg4: memref<128x128xf32, #tpu.memory_space<vmem>>, %arg5: memref<1x128xf32, #tpu.memory_space<vmem>>, %arg6: memref<128x128xf32, #tpu.memory_space<vmem>>, %arg7: memref<1x128xf32, #tpu.memory_space<vmem>>, %arg8: memref<8x4xf32, #tpu.memory_space<vmem>>) attributes {dimension_semantics = [#tpu.dimension_semantics<parallel>], iteration_bounds = array<i64: 1>, scalar_prefetch = 0 : i64, scratch_operands = 0 : i64, tpu.core_type = #tpu.core_type<tc>, window_params = [{transform_indices = @transform_0, window_bounds = array<i64: 8, 16>}, {pipeline_mode = #tpu.pipeline_mode<synchronous>, transform_indices = @transform_1, window_bounds = array<i64: 16, 128>}, {pipeline_mode = #tpu.pipeline_mode<synchronous>, transform_indices = @transform_2, window_bounds = array<i64: 1, 128>}, {pipeline_mode = #tpu.pipeline_mode<synchronous>, transform_indices = @transform_3, window_bounds = array<i64: 128, 128>}, {pipeline_mode = #tpu.pipeline_mode<synchronous>, transform_indices = @transform_4, window_bounds = array<i64: 1, 128>}, {pipeline_mode = #tpu.pipeline_mode<synchronous>, transform_indices = @transform_5, window_bounds = array<i64: 128, 128>}, {pipeline_mode = #tpu.pipeline_mode<synchronous>, transform_indices = @transform_6, window_bounds = array<i64: 1, 128>}, {transform_indices = @transform_7, window_bounds = array<i64: 8, 4>}]} {
    %c0 = arith.constant 0 : index
    %c0_0 = arith.constant 0 : index
    %0 = vector.load %arg1[%c0, %c0_0] : memref<8x16xf32, #tpu.memory_space<vmem>>, vector<8x16xf32>
    %c0_1 = arith.constant 0 : index
    %c0_2 = arith.constant 0 : index
    %1 = vector.load %arg2[%c0_1, %c0_2] : memref<16x128xf32, #tpu.memory_space<vmem>>, vector<16x128xf32>
    %cst = arith.constant dense<0.000000e+00> : vector<8x128xf32>
    %2 = tpu.matmul %0, %1, %cst {dimension_numbers = #tpu.dot_dimension_numbers<[1], [0], [0], [1], [0, 0, 1, 1], [], []>} : vector<8x16xf32>, vector<16x128xf32>, vector<8x128xf32> -> vector<8x128xf32>
    %c0_3 = arith.constant 0 : index
    %c0_4 = arith.constant 0 : index
    %3 = vector.load %arg3[%c0_3, %c0_4] : memref<1x128xf32, #tpu.memory_space<vmem>>, vector<1x128xf32>
    %4 = vector.broadcast %3 : vector<1x128xf32> to vector<8x128xf32>
    %5 = arith.addf %2, %4 : vector<8x128xf32>
    %cst_5 = arith.constant 0.000000e+00 : f32
    %6 = vector.broadcast %cst_5 : f32 to vector<8x128xf32>
    %7 = arith.maximumf %5, %6 : vector<8x128xf32>
    %c0_6 = arith.constant 0 : index
    %c0_7 = arith.constant 0 : index
    %8 = vector.load %arg4[%c0_6, %c0_7] : memref<128x128xf32, #tpu.memory_space<vmem>>, vector<128x128xf32>
    %cst_8 = arith.constant dense<0.000000e+00> : vector<8x128xf32>
    %9 = tpu.matmul %7, %8, %cst_8 {dimension_numbers = #tpu.dot_dimension_numbers<[1], [0], [0], [1], [0, 0, 1, 1], [], []>} : vector<8x128xf32>, vector<128x128xf32>, vector<8x128xf32> -> vector<8x128xf32>
    %c0_9 = arith.constant 0 : index
    %c0_10 = arith.constant 0 : index
    %10 = vector.load %arg5[%c0_9, %c0_10] : memref<1x128xf32, #tpu.memory_space<vmem>>, vector<1x128xf32>
    %11 = vector.broadcast %10 : vector<1x128xf32> to vector<8x128xf32>
    %12 = arith.addf %9, %11 : vector<8x128xf32>
    %cst_11 = arith.constant 0.000000e+00 : f32
    %13 = vector.broadcast %cst_11 : f32 to vector<8x128xf32>
    %14 = arith.maximumf %12, %13 : vector<8x128xf32>
    %c0_12 = arith.constant 0 : index
    %c0_13 = arith.constant 0 : index
    %15 = vector.load %arg6[%c0_12, %c0_13] : memref<128x128xf32, #tpu.memory_space<vmem>>, vector<128x128xf32>
    %cst_14 = arith.constant dense<0.000000e+00> : vector<8x128xf32>
    %16 = tpu.matmul %14, %15, %cst_14 {dimension_numbers = #tpu.dot_dimension_numbers<[1], [0], [0], [1], [0, 0, 1, 1], [], []>} : vector<8x128xf32>, vector<128x128xf32>, vector<8x128xf32> -> vector<8x128xf32>
    %c0_15 = arith.constant 0 : index
    %c0_16 = arith.constant 0 : index
    %17 = vector.load %arg7[%c0_15, %c0_16] : memref<1x128xf32, #tpu.memory_space<vmem>>, vector<1x128xf32>
    %18 = vector.broadcast %17 : vector<1x128xf32> to vector<8x128xf32>
    %19 = arith.addf %16, %18 : vector<8x128xf32>
    %20 = vector.extract_strided_slice %19 {offsets = [0, 0], sizes = [8, 4], strides = [1, 1]} : vector<8x128xf32> to vector<8x4xf32>
    %c0_17 = arith.constant 0 : index
    %c0_18 = arith.constant 0 : index
    %21 = vector.load %arg8[%c0_17, %c0_18] : memref<8x4xf32, #tpu.memory_space<vmem>>, vector<8x4xf32>
    tpu.vector_store %arg8[%c0_17, %c0_18], %20 {strides = array<i32>} : memref<8x4xf32, #tpu.memory_space<vmem>>, vector<8x4xf32>,
    return
  }
  func.func @transform_0(%arg0: i32) -> (i32, i32) {
    %c0_i32 = arith.constant 0 : i32
    %c0_i32_0 = arith.constant 0 : i32
    return %arg0, %c0_i32 : i32, i32
  }
  func.func @transform_1(%arg0: i32) -> (i32, i32) {
    %c0_i32 = arith.constant 0 : i32
    %c0_i32_0 = arith.constant 0 : i32
    %c0_i32_1 = arith.constant 0 : i32
    return %c0_i32, %c0_i32_0 : i32, i32
  }
  func.func @transform_2(%arg0: i32) -> (i32, i32) {
    %c0_i32 = arith.constant 0 : i32
    %c0_i32_0 = arith.constant 0 : i32
    %c0_i32_1 = arith.constant 0 : i32
    return %c0_i32, %c0_i32_0 : i32, i32
  }
  func.func @transform_3(%arg0: i32) -> (i32, i32) {
    %c0_i32 = arith.constant 0 : i32
    %c0_i32_0 = arith.constant 0 : i32
    %c0_i32_1 = arith.constant 0 : i32
    return %c0_i32, %c0_i32_0 : i32, i32
  }
  func.func @transform_4(%arg0: i32) -> (i32, i32) {
    %c0_i32 = arith.constant 0 : i32
    %c0_i32_0 = arith.constant 0 : i32
    %c0_i32_1 = arith.constant 0 : i32
    return %c0_i32, %c0_i32_0 : i32, i32
  }
  func.func @transform_5(%arg0: i32) -> (i32, i32) {
    %c0_i32 = arith.constant 0 : i32
    %c0_i32_0 = arith.constant 0 : i32
    %c0_i32_1 = arith.constant 0 : i32
    return %c0_i32, %c0_i32_0 : i32, i32
  }
  func.func @transform_6(%arg0: i32) -> (i32, i32) {
    %c0_i32 = arith.constant 0 : i32
    %c0_i32_0 = arith.constant 0 : i32
    %c0_i32_1 = arith.constant 0 : i32
    return %c0_i32, %c0_i32_0 : i32, i32
  }
  func.func @transform_7(%arg0: i32) -> (i32, i32) {
    %c0_i32 = arith.constant 0 : i32
    %c0_i32_0 = arith.constant 0 : i32
    return %arg0, %c0_i32 : i32, i32
  }
}

</mosaic_0001>

<bundles_post_ra>
// kernel: tpu_custom_call.1
= control target key start
LH: loop header
LB: loop body
LE: loop exit
PB: predicated region body
PF: predicated region fallthrough
CT: control target
= control target key end

     0   :  { %12 = vsyncpa [#allocation3], 0  ;;  %s391_s0 = inlined_call_operand.hbm [shape: f32[8,16], index: 0, kind: input, shape index: {}]   ;;  %s392_s1 = inlined_call_operand.hbm [shape: f32[16,128], index: 1, kind: input, shape index: {}]   ;;  %s393_s2 = inlined_call_operand.vmem [shape: f32[1,128], index: 2, kind: input, shape index: {}]   ;;  %s394_s3 = inlined_call_operand.hbm [shape: f32[128,128], index: 3, kind: input, shape index: {}]   ;;  %s395_s4 = inlined_call_operand.vmem [shape: f32[1,128], index: 4, kind: input, shape index: {}]   ;;  %s396_s5 = inlined_call_operand.hbm [shape: f32[128,128], index: 5, kind: input, shape index: {}]   ;;  %s397_s6 = inlined_call_operand.vmem [shape: f32[1,128], index: 6, kind: input, shape index: {}]   ;;  %s398_s7 = inlined_call_operand.vmem [shape: f32[8,4], index: 7, kind: output, shape index: {}]  }
   0x1   :  { %13 = vsyncpa [#allocation5], 0  ;;  %s30_s26 = sshll.u32 %s392_s1, 4  ;;  %s31_s26 = int_to_ptr.hbm [resolvable:$true] %s30_s26 }
   0x2   :  { %14 = vsyncpa [#allocation8], 0  ;;  %s321_s27 = smov [#allocation4]   ;;  %s20_s8 = sshll.u32 %s391_s0, 4  ;;  %s21_s8 = int_to_ptr.hbm [resolvable:$true] %s20_s8 }
   0x3   :  { %s32_s28 = sshll.u32 %s321_s27, 4  ;;  %s322_s9 = smov 128   ;;  %s33_s28 = int_to_ptr.vmem [resolvable:$true] %s32_s28 }
   0x4   :  { %s323_s10 = smov 8   ;;  %s324_s11 = smov [#allocation2]  }
   0x5   :  { %38 = dma.hbm_to_vmem [thread:$0]  %s31_s26, 256, %s33_s28, [#allocation5], %s322_s9, %s322_s9, %s323_s10  }
   0x6   :  { %s22_s12 = sshll.u32 %s324_s11, 4  ;;  %s45_s15 = sshll.u32 %s394_s3, 4  ;;  %s23_s12 = int_to_ptr.vmem [resolvable:$true] %s22_s12  ;;  %s46_s15 = int_to_ptr.hbm [resolvable:$true] %s45_s15 }
   0x7   :  { %25 = dma.hbm_to_vmem [thread:$0]  %s21_s8, 128, %s23_s12, [#allocation3]  }
   0x8   :  { %s60_s17 = sshll.u32 %s396_s5, 4  ;;  %s325_s18 = smov [#allocation6]   ;;  %s61_s17 = int_to_ptr.hbm [resolvable:$true] %s60_s17 }
   0x9   :  { %s47_s19 = sshll.u32 %s325_s18, 4  ;;  %s326_s0 = smov [#allocation7]   ;;  %s48_s19 = int_to_ptr.vmem [resolvable:$true] %s47_s19 }
   0xa   :  { %53 = dma.hbm_to_vmem [thread:$0]  %s46_s15, 2048, %s48_s19, [#allocation5], %s322_s9, %s322_s9, %s323_s10  }
   0xb   :  { %s62_s20 = sshll.u32 %s326_s0, 4  ;;  %s63_s20 = int_to_ptr.vmem [resolvable:$true] %s62_s20 }
   0xc   :  { %68 = dma.hbm_to_vmem [thread:$0]  %s61_s17, 2048, %s63_s20, [#allocation8], %s322_s9, %s322_s9, %s323_s10  }
   0xd   :  { %315 = dma.done.wait [#allocation3], 128  }
   0xe   :  { %316 = vsyncadd [#allocation3], 4294967168 }
   0xf   :  { %317 = dma.done.wait [#allocation5], 2304  }
  0x10   :  { %318 = vsyncadd [#allocation5], 4294964992 }
  0x11   :  { %319 = dma.done.wait [#allocation8], 2048  }
  0x12   :  { %320 = vsyncadd [#allocation8], 4294965248  ;;  %v89_v0 = vld [vmem:[#allocation4 + $0x8] sm:$0xff]  ;;  %v88_v1 = vld [vmem:[#allocation4] sm:$0xff]  ;;  %vm94_vm0 = vcmask 130048   ;;  %vm200_vm1 = vcmask 31744  }
  0x13   :  { %112 = vmatpush.msra.mxu0 %v89_v0  ;;  %v87_v2 = vld [vmem:[#allocation2] sm:$0xff]  ;;  %v134_v3 = vld [vmem:[#allocation6 + $0x78] sm:$0xff]  ;;  %v133_v4 = vld [vmem:[#allocation6 + $0x70] sm:$0xff] }
  0x14   :  { %139 = vmatpush.msra.mxu1 %v134_v3  ;;  %v132_v5 = vld [vmem:[#allocation6 + $0x68] sm:$0xff]  ;;  %v131_v6 = vld [vmem:[#allocation6 + $0x60] sm:$0xff]  ;;  %v130_v7 = vld [vmem:[#allocation6 + $0x58] sm:$0xff] }
  0x15   :  { %113 = vmatpush.msra.mxu0 %v88_v1  ;;  %v129_v8 = vld [vmem:[#allocation6 + $0x50] sm:$0xff]  ;;  %v128_v9 = vld [vmem:[#allocation6 + $0x48] sm:$0xff]  ;;  %v127_v10 = vld [vmem:[#allocation6 + $0x40] sm:$0xff] }
  0x16   :  { %209 = vmatmul.msk.f32.vlgmr.msra.gmra.mxu0 %vm94_vm0, %v87_v2  ;;  %140 = vmatpush.msra.mxu1 %v133_v4  ;;  %v126_v11 = vld [vmem:[#allocation6 + $0x38] sm:$0xff]  ;;  %v125_v12 = vld [vmem:[#allocation6 + $0x30] sm:$0xff]  ;;  %v124_v13 = vld [vmem:[#allocation6 + $0x28] sm:$0xff] }
  0x17   :  { %v123_v14 = vld [vmem:[#allocation6 + $0x20] sm:$0xff]  ;;  %v122_v15 = vld [vmem:[#allocation6 + $0x18] sm:$0xff]  ;;  %v121_v16 = vld [vmem:[#allocation6 + $0x10] sm:$0xff] }
  0x18   :  { %141 = vmatpush.msra.mxu1 %v132_v5  ;;  %v120_v17 = vld [vmem:[#allocation6 + $0x8] sm:$0xff]  ;;  %v119_v18 = vld [vmem:[#allocation6] sm:$0xff]  ;;  %v175_v19 = vld [vmem:[#allocation7 + $0x78] sm:$0xff] }
  0x19   :  { %v174_v20 = vld [vmem:[#allocation7 + $0x70] sm:$0xff]  ;;  %180 = vmatpush.msra.mxu2 %v175_v19  ;;  %v173_v21 = vld [vmem:[#allocation7 + $0x68] sm:$0xff]  ;;  %v172_v22 = vld [vmem:[#allocation7 + $0x60] sm:$0xff] }
  0x1a   :  { %142 = vmatpush.msra.mxu1 %v131_v6  ;;  %v171_v23 = vld [vmem:[#allocation7 + $0x58] sm:$0xff]  ;;  %v170_v24 = vld [vmem:[#allocation7 + $0x50] sm:$0xff]  ;;  %v169_v25 = vld [vmem:[#allocation7 + $0x48] sm:$0xff] }
  0x1b   :  { %181 = vmatpush.msra.mxu2 %v174_v20  ;;  %v168_v26 = vld [vmem:[#allocation7 + $0x40] sm:$0xff]  ;;  %v167_v27 = vld [vmem:[#allocation7 + $0x38] sm:$0xff]  ;;  %v166_v28 = vld [vmem:[#allocation7 + $0x30] sm:$0xff] }
  0x1c   :  { %143 = vmatpush.msra.mxu1 %v130_v7  ;;  %v165_v29 = vld [vmem:[#allocation7 + $0x28] sm:$0xff]  ;;  %v164_v30 = vld [vmem:[#allocation7 + $0x20] sm:$0xff]  ;;  %v163_v31 = vld [vmem:[#allocation7 + $0x18] sm:$0xff] }
  0x1d   :  { %182 = vmatpush.msra.mxu2 %v173_v21  ;;  %v216_v32 = vld [vmem:[%s393_s2] ss:$0 sm:$0xff]  ;;  %v162_v36 = vld [vmem:[#allocation7 + $0x10] sm:$0xff]  ;;  %v160_v38 = vld [vmem:[#allocation7] sm:$0xff] }
  0x1e   :  { %144 = vmatpush.msra.mxu1 %v129_v8  ;;  %v161_v37 = vld [vmem:[#allocation7 + $0x8] sm:$0xff] }
  0x1f   :  { %183 = vmatpush.msra.mxu2 %v172_v22  ;;  %v217_v39 = vld [vmem:[%s395_s4] ss:$0 sm:$0xff] }
  0x20   :  { %145 = vmatpush.msra.mxu1 %v128_v9  ;;  %v218_v43 = vld [vmem:[%s397_s6] ss:$0 sm:$0xff] }
  0x21   :  { %184 = vmatpush.msra.mxu2 %v171_v23 }
  0x22   :  { %146 = vmatpush.msra.mxu1 %v127_v10 }
  0x23   :  { %185 = vmatpush.msra.mxu2 %v170_v24 }
  0x24   :  { %147 = vmatpush.msra.mxu1 %v126_v11 }
  0x25   :  { %186 = vmatpush.msra.mxu2 %v169_v25 }
  0x26   :  { %148 = vmatpush.msra.mxu1 %v125_v12 }
  0x27   :  { %187 = vmatpush.msra.mxu2 %v168_v26 }
  0x28   :  { %149 = vmatpush.msra.mxu1 %v124_v13 }
  0x29   :  { %188 = vmatpush.msra.mxu2 %v167_v27 }
  0x2a   :  { %150 = vmatpush.msra.mxu1 %v123_v14 }
  0x2b   :  { %189 = vmatpush.msra.mxu2 %v166_v28 }
  0x2c   :  { %151 = vmatpush.msra.mxu1 %v122_v15 }
  0x2d   :  { %190 = vmatpush.msra.mxu2 %v165_v29 }
  0x2e   :  { %152 = vmatpush.msra.mxu1 %v121_v16 }
  0x2f   :  { %191 = vmatpush.msra.mxu2 %v164_v30 }
  0x30   :  { %153 = vmatpush.msra.mxu1 %v120_v17 }
  0x31   :  { %192 = vmatpush.msra.mxu2 %v163_v31 }
  0x32   :  { %154 = vmatpush.msra.mxu1 %v119_v18 }
  0x33   :  { %193 = vmatpush.msra.mxu2 %v162_v36 }
  0x35   :  { %194 = vmatpush.msra.mxu2 %v161_v37 }
  0x37   :  { %195 = vmatpush.msra.mxu2 %v160_v38 }
  0x93   :  { %v115_v33 = vpop.f32.mrf.mxu0 }
  0x94   :  { %v116_v34 = vadd.f32 %v216_v32, %v115_v33 }
  0x96   :  { %v118_v35 = vmax.f32 %v116_v34, 0.0 }
  0x98   :  { %155 = vmatmul.f32.vlgmr.msra.gmra.mxu1 %v118_v35 }
 0x115   :  { %v156_v40 = vpop.f32.mrf.mxu1 }
 0x116   :  { %v157_v41 = vadd.f32 %v217_v39, %v156_v40 }
 0x118   :  { %v159_v42 = vmax.f32 %v157_v41, 0.0 }
 0x11a   :  { %196 = vmatmul.f32.vlgmr.msra.gmra.mxu2 %v159_v42 }
 0x19d   :  { %v197_v44 = vpop.f32.mrf.mxu2 }
 0x19e   :  { %v198_v45 = vadd.f32 %v218_v43, %v197_v44 }
 0x1a0   :  { %201 = vst.msk [vmem:[%s398_s7] sm:$0xff] %vm200_vm1, %v198_v45 }
 0x1a1   :  { %206 = vsyncpa [#allocation3], 1 }
 0x1a2   :  { %207 = vsyncpa [#allocation5], 1 }
 0x1a3   :  { %208 = vsyncpa [#allocation8], 1 }

</bundles_post_ra>
